<compile_context>
chip_gen: v7x
topology: tpu7x:2x2x1
jax: 0.10.0
libtpu: 0.0.40
codegen_flags: <defaults>
</compile_context>

<pallas_src>
import math

import jax
import jax.numpy as jnp
from jax.experimental import pallas as pl
from jax.experimental.pallas import tpu as pltpu


HIDDEN = (256, 128, 64, 32)
N_LAYERS = len(HIDDEN) + 1  # 5 linear layers per Q-net
HEAD_PAD = 128              # lane-dense padded head width (q1 -> col 0, q2 -> col 1)


def _round_up(x, m):
    return ((x + m - 1) // m) * m


def _block_diag(a, b):
    """[[a, 0], [0, b]] - exact fusion of two independent linear layers."""
    za = jnp.zeros((a.shape[0], b.shape[1]), a.dtype)
    zb = jnp.zeros((b.shape[0], a.shape[1]), b.dtype)
    return jnp.block([[a, za], [zb, b]])


# ---------------------------------------------------------------------------
# Kernel
# ---------------------------------------------------------------------------
def double_q_kernel(x_ref,
                    w0_ref, w1_ref, w2_ref, w3_ref, w4_ref,
                    b0_ref, b1_ref, b2_ref, b3_ref, b4_ref,
                    out_ref):
    """Fused double-Q MLP on one (TILE_B, K) batch tile.

    Weights may be f32 or bf16 (MXU operands); biases / elementwise path stay
    f32; accumulation is always f32 via preferred_element_type.  Output block is
    (TILE_B, 128) lane-dense: column 0 = q1, column 1 = q2, rest zeros.
    """

    def dense(x, w_ref, b_ref):
        w = w_ref[...]
        return jnp.dot(x.astype(w.dtype), w,
                       preferred_element_type=jnp.float32) + b_ref[...]

    h = jnp.maximum(dense(x_ref[...], w0_ref, b0_ref), 0.0)   # (tb, 512)
    h = jnp.maximum(dense(h, w1_ref, b1_ref), 0.0)            # (tb, 256)
    h = jnp.maximum(dense(h, w2_ref, b2_ref), 0.0)            # (tb, 128)
    h = jnp.maximum(dense(h, w3_ref, b3_ref), 0.0)            # (tb, 64)
    out_ref[...] = dense(h, w4_ref, b4_ref).astype(out_ref.dtype)  # (tb, 128)


# ---------------------------------------------------------------------------
# Parameters
# ---------------------------------------------------------------------------
def init_params(key, obs_dim, act_dim):
    """Per-net params mirroring nn.Linear's U(-1/sqrt(in), 1/sqrt(in)) init.

    Stored transposed (in, out) so the kernel computes y = x @ W + b.
    """
    sizes = [obs_dim + act_dim] + list(HIDDEN) + [1]
    params = {}
    for net in ("q1", "q2"):
        ws, bs = [], []
        for i in range(N_LAYERS):
            fan_in, fan_out = sizes[i], sizes[i + 1]
            key, kw, kb = jax.random.split(key, 3)
            bound = 1.0 / math.sqrt(fan_in)
            w = jax.random.uniform(kw, (fan_in, fan_out), jnp.float32,
                                   minval=-bound, maxval=bound)
            b = jax.random.uniform(kb, (1, fan_out), jnp.float32,
                                   minval=-bound, maxval=bound)
            ws.append(w)
            bs.append(b)
        params[net] = (ws, bs)
    return params


def fuse_params(params, mxu_dtype=jnp.bfloat16):
    """Fuse the two Q-nets into one MLP (exact), with a lane-dense padded head.

    Layer 0: concat along the output dim -> (K, 512).
    Layers 1-3: block-diagonal -> (512,256), (256,128), (128,64).
    Layer 4 (head): block-diagonal (64,2), zero-padded to (64,128) so the kernel
    emits unmasked 128-lane stores; q1 lands in column 0, q2 in column 1.
    Biases: concat along out dim (head padded to (1,128)); always kept f32.
    """
    q1_ws, q1_bs = params["q1"]
    q2_ws, q2_bs = params["q2"]

    fused_ws = [jnp.concatenate([q1_ws[0], q2_ws[0]], axis=1)]   # (K, 512)
    for i in range(1, N_LAYERS):
        fused_ws.append(_block_diag(q1_ws[i], q2_ws[i]))
    fused_bs = [jnp.concatenate([q1_bs[i], q2_bs[i]], axis=1)
                for i in range(N_LAYERS)]

    # Pad the (64,2)/(1,2) head to (64,128)/(1,128) - lane-dense output.
    w4 = fused_ws[-1]
    b4 = fused_bs[-1]
    fused_ws[-1] = jnp.pad(w4, ((0, 0), (0, HEAD_PAD - w4.shape[1])))
    fused_bs[-1] = jnp.pad(b4, ((0, 0), (0, HEAD_PAD - b4.shape[1])))

    fused_ws = [w.astype(mxu_dtype) for w in fused_ws]
    fused_bs = [b.astype(jnp.float32) for b in fused_bs]
    return fused_ws, fused_bs


# ---------------------------------------------------------------------------
# Wrapper
# ---------------------------------------------------------------------------
def double_q_forward(obs, act, fused_params, *, tile_b=1024):
    """Returns (q1, q2), each (B, 1) f32."""
    fused_ws, fused_bs = fused_params
    B = obs.shape[0]

    # Wrapper-side concat (free XLA plumbing): one (B, K) input, one K-dim matmul.
    x = jnp.concatenate([obs, act], axis=1).astype(jnp.float32)
    K = x.shape[1]

    # Batch tiling: multiple of 8 sublanes, capped at tile_b, and sized so the
    # grid has >= 2 steps whenever B > 8 (keeps both v7x TensorCores busy via
    # dimension_semantics=("parallel",)); pad batch so Bp % tb == 0.
    tb = min(tile_b, _round_up(pl.cdiv(B, 2), 8))
    Bp = _round_up(B, tb)
    if Bp != B:
        x = jnp.pad(x, ((0, Bp - B), (0, 0)))

    grid = (Bp // tb,)

    def batch_spec(feat):
        return pl.BlockSpec((tb, feat), lambda i: (i, 0))

    def const_spec(shape):
        # Constant block index -> weights/biases stay VMEM-resident across grid.
        return pl.BlockSpec(shape, lambda i: (0, 0))

    in_specs = ([batch_spec(K)]
                + [const_spec(w.shape) for w in fused_ws]
                + [const_spec(b.shape) for b in fused_bs])
    out_spec = batch_spec(HEAD_PAD)

    flops = 2 * Bp * sum(int(w.shape[0]) * int(w.shape[1]) for w in fused_ws)
    bytes_accessed = int(
        Bp * (K + HEAD_PAD) * 4
        + sum(int(w.size) * w.dtype.itemsize for w in fused_ws)
        + sum(int(b.size) * b.dtype.itemsize for b in fused_bs))

    out = pl.pallas_call(
        double_q_kernel,
        out_shape=jax.ShapeDtypeStruct((Bp, HEAD_PAD), jnp.float32),
        grid=grid,
        in_specs=in_specs,
        out_specs=out_spec,
        compiler_params=pltpu.CompilerParams(
            dimension_semantics=("parallel",),
            # Guardrail: keep <= 32 MiB so aggressive tile_b bumps can never OOM
            # v7x's 64 MiB physical VMEM; at tb=1024-2048 usage is only a few MB.
            vmem_limit_bytes=32 * 1024 * 1024,
        ),
        cost_estimate=pl.CostEstimate(
            flops=flops, transcendentals=0, bytes_accessed=bytes_accessed),
    )(x, *fused_ws, *fused_bs)

    out = out[:B]
    return out[:, 0:1], out[:, 1:2]


# ---------------------------------------------------------------------------
# Pure-JAX reference (unfused, matches the PyTorch module exactly)
# ---------------------------------------------------------------------------
def _reference_forward(obs, act, params):
    x = jnp.concatenate([obs, act], axis=1)

    def run(ws, bs):
        h = x
        for i in range(N_LAYERS):
            h = h @ ws[i] + bs[i]
            if i + 1 < N_LAYERS:
                h = jnp.maximum(h, 0.0)
        return h

    return run(*params["q1"]), run(*params["q2"])


if __name__ == "__main__":
    obs_dim, act_dim, batch = 12, 4, 4

    key = jax.random.PRNGKey(0)
    k_obs, k_act, k_params = jax.random.split(key, 3)
    obs = jax.random.normal(k_obs, (batch, obs_dim), jnp.float32)
    act = jax.random.normal(k_act, (batch, act_dim), jnp.float32)
    params = init_params(k_params, obs_dim, act_dim)

    r1, r2 = _reference_forward(obs, act, params)

    # --- f32 path: exact vs reference ------------------------------------
    fused_f32 = fuse_params(params, mxu_dtype=jnp.float32)
    q1, q2 = double_q_forward(obs, act, fused_f32)
    jax.block_until_ready((q1, q2))
    assert q1.shape == (batch, 1) and q2.shape == (batch, 1)
    assert jnp.allclose(q1, r1, atol=1e-5, rtol=1e-5)
    assert jnp.allclose(q2, r2, atol=1e-5, rtol=1e-5)

    # --- multi-tile grid path (exercises batch pipelining + padding) -----
    k2 = jax.random.PRNGKey(1)
    ko2, ka2 = jax.random.split(k2)
    obs_big = jax.random.normal(ko2, (300, obs_dim), jnp.float32)
    act_big = jax.random.normal(ka2, (300, act_dim), jnp.float32)
    q1b, q2b = double_q_forward(obs_big, act_big, fused_f32, tile_b=128)
    jax.block_until_ready((q1b, q2b))
    r1b, r2b = _reference_forward(obs_big, act_big, params)
    assert jnp.allclose(q1b, r1b, atol=1e-4, rtol=1e-4)
    assert jnp.allclose(q2b, r2b, atol=1e-4, rtol=1e-4)

    # --- default big-tile path (tile_b=1024, 2-step parallel grid) --------
    k3 = jax.random.PRNGKey(2)
    ko3, ka3 = jax.random.split(k3)
    obs_1k = jax.random.normal(ko3, (1536, obs_dim), jnp.float32)
    act_1k = jax.random.normal(ka3, (1536, act_dim), jnp.float32)
    q1c, q2c = double_q_forward(obs_1k, act_1k, fused_f32)
    jax.block_until_ready((q1c, q2c))
    r1c, r2c = _reference_forward(obs_1k, act_1k, params)
    assert jnp.allclose(q1c, r1c, atol=1e-4, rtol=1e-4)
    assert jnp.allclose(q2c, r2c, atol=1e-4, rtol=1e-4)

    # --- bf16-MXU default fast path; f32 accumulate, loose tolerance ------
    fused_bf16 = fuse_params(params)  # default mxu_dtype=bfloat16
    q1h, q2h = double_q_forward(obs, act, fused_bf16)
    jax.block_until_ready((q1h, q2h))
    assert jnp.allclose(q1h, r1, atol=5e-2, rtol=5e-2)
    assert jnp.allclose(q2h, r2, atol=5e-2, rtol=5e-2)

    print("KERNEL_OK")
</pallas_src>

<mosaic_0001>
module attributes {stable_mosaic.version = 11 : i64} {
  func.func @double_q_kernel(%arg0: i32, %arg1: memref<8x16xf32, #tpu.memory_space<vmem>>, %arg2: memref<16x512xf32, #tpu.memory_space<vmem>>, %arg3: memref<512x256xf32, #tpu.memory_space<vmem>>, %arg4: memref<256x128xf32, #tpu.memory_space<vmem>>, %arg5: memref<128x64xf32, #tpu.memory_space<vmem>>, %arg6: memref<64x128xf32, #tpu.memory_space<vmem>>, %arg7: memref<1x512xf32, #tpu.memory_space<vmem>>, %arg8: memref<1x256xf32, #tpu.memory_space<vmem>>, %arg9: memref<1x128xf32, #tpu.memory_space<vmem>>, %arg10: memref<1x64xf32, #tpu.memory_space<vmem>>, %arg11: memref<1x128xf32, #tpu.memory_space<vmem>>, %arg12: memref<8x128xf32, #tpu.memory_space<vmem>>) attributes {dimension_semantics = [#tpu.dimension_semantics<parallel>], iteration_bounds = array<i64: 1>, scalar_prefetch = 0 : i64, scratch_operands = 0 : i64, tpu.core_type = #tpu.core_type<tc>, window_params = [{transform_indices = @transform_0, window_bounds = array<i64: 8, 16>}, {pipeline_mode = #tpu.pipeline_mode<synchronous>, transform_indices = @transform_1, window_bounds = array<i64: 16, 512>}, {pipeline_mode = #tpu.pipeline_mode<synchronous>, transform_indices = @transform_2, window_bounds = array<i64: 512, 256>}, {pipeline_mode = #tpu.pipeline_mode<synchronous>, transform_indices = @transform_3, window_bounds = array<i64: 256, 128>}, {pipeline_mode = #tpu.pipeline_mode<synchronous>, transform_indices = @transform_4, window_bounds = array<i64: 128, 64>}, {pipeline_mode = #tpu.pipeline_mode<synchronous>, transform_indices = @transform_5, window_bounds = array<i64: 64, 128>}, {pipeline_mode = #tpu.pipeline_mode<synchronous>, transform_indices = @transform_6, window_bounds = array<i64: 1, 512>}, {pipeline_mode = #tpu.pipeline_mode<synchronous>, transform_indices = @transform_7, window_bounds = array<i64: 1, 256>}, {pipeline_mode = #tpu.pipeline_mode<synchronous>, transform_indices = @transform_8, window_bounds = array<i64: 1, 128>}, {pipeline_mode = #tpu.pipeline_mode<synchronous>, transform_indices = @transform_9, window_bounds = array<i64: 1, 64>}, {pipeline_mode = #tpu.pipeline_mode<synchronous>, transform_indices = @transform_10, window_bounds = array<i64: 1, 128>}, {transform_indices = @transform_11, window_bounds = array<i64: 8, 128>}]} {
    %c0 = arith.constant 0 : index
    %c0_0 = arith.constant 0 : index
    %0 = vector.load %arg1[%c0, %c0_0] : memref<8x16xf32, #tpu.memory_space<vmem>>, vector<8x16xf32>
    %c0_1 = arith.constant 0 : index
    %c0_2 = arith.constant 0 : index
    %1 = vector.load %arg2[%c0_1, %c0_2] : memref<16x512xf32, #tpu.memory_space<vmem>>, vector<16x512xf32>
    %cst = arith.constant dense<0.000000e+00> : vector<8x512xf32>
    %2 = tpu.matmul %0, %1, %cst {dimension_numbers = #tpu.dot_dimension_numbers<[1], [0], [0], [1], [0, 0, 1, 1], [], []>} : vector<8x16xf32>, vector<16x512xf32>, vector<8x512xf32> -> vector<8x512xf32>
    %c0_3 = arith.constant 0 : index
    %c0_4 = arith.constant 0 : index
    %3 = vector.load %arg7[%c0_3, %c0_4] : memref<1x512xf32, #tpu.memory_space<vmem>>, vector<1x512xf32>
    %4 = vector.broadcast %3 : vector<1x512xf32> to vector<8x512xf32>
    %5 = arith.addf %2, %4 : vector<8x512xf32>
    %cst_5 = arith.constant 0.000000e+00 : f32
    %6 = vector.broadcast %cst_5 : f32 to vector<8x512xf32>
    %7 = arith.maximumf %5, %6 : vector<8x512xf32>
    %c0_6 = arith.constant 0 : index
    %c0_7 = arith.constant 0 : index
    %8 = vector.load %arg3[%c0_6, %c0_7] : memref<512x256xf32, #tpu.memory_space<vmem>>, vector<512x256xf32>
    %cst_8 = arith.constant dense<0.000000e+00> : vector<8x256xf32>
    %9 = tpu.matmul %7, %8, %cst_8 {dimension_numbers = #tpu.dot_dimension_numbers<[1], [0], [0], [1], [0, 0, 1, 1], [], []>} : vector<8x512xf32>, vector<512x256xf32>, vector<8x256xf32> -> vector<8x256xf32>
    %c0_9 = arith.constant 0 : index
    %c0_10 = arith.constant 0 : index
    %10 = vector.load %arg8[%c0_9, %c0_10] : memref<1x256xf32, #tpu.memory_space<vmem>>, vector<1x256xf32>
    %11 = vector.broadcast %10 : vector<1x256xf32> to vector<8x256xf32>
    %12 = arith.addf %9, %11 : vector<8x256xf32>
    %cst_11 = arith.constant 0.000000e+00 : f32
    %13 = vector.broadcast %cst_11 : f32 to vector<8x256xf32>
    %14 = arith.maximumf %12, %13 : vector<8x256xf32>
    %c0_12 = arith.constant 0 : index
    %c0_13 = arith.constant 0 : index
    %15 = vector.load %arg4[%c0_12, %c0_13] : memref<256x128xf32, #tpu.memory_space<vmem>>, vector<256x128xf32>
    %cst_14 = arith.constant dense<0.000000e+00> : vector<8x128xf32>
    %16 = tpu.matmul %14, %15, %cst_14 {dimension_numbers = #tpu.dot_dimension_numbers<[1], [0], [0], [1], [0, 0, 1, 1], [], []>} : vector<8x256xf32>, vector<256x128xf32>, vector<8x128xf32> -> vector<8x128xf32>
    %c0_15 = arith.constant 0 : index
    %c0_16 = arith.constant 0 : index
    %17 = vector.load %arg9[%c0_15, %c0_16] : memref<1x128xf32, #tpu.memory_space<vmem>>, vector<1x128xf32>
    %18 = vector.broadcast %17 : vector<1x128xf32> to vector<8x128xf32>
    %19 = arith.addf %16, %18 : vector<8x128xf32>
    %cst_17 = arith.constant 0.000000e+00 : f32
    %20 = vector.broadcast %cst_17 : f32 to vector<8x128xf32>
    %21 = arith.maximumf %19, %20 : vector<8x128xf32>
    %c0_18 = arith.constant 0 : index
    %c0_19 = arith.constant 0 : index
    %22 = vector.load %arg5[%c0_18, %c0_19] : memref<128x64xf32, #tpu.memory_space<vmem>>, vector<128x64xf32>
    %cst_20 = arith.constant dense<0.000000e+00> : vector<8x64xf32>
    %23 = tpu.matmul %21, %22, %cst_20 {dimension_numbers = #tpu.dot_dimension_numbers<[1], [0], [0], [1], [0, 0, 1, 1], [], []>} : vector<8x128xf32>, vector<128x64xf32>, vector<8x64xf32> -> vector<8x64xf32>
    %c0_21 = arith.constant 0 : index
    %c0_22 = arith.constant 0 : index
    %24 = vector.load %arg10[%c0_21, %c0_22] : memref<1x64xf32, #tpu.memory_space<vmem>>, vector<1x64xf32>
    %25 = vector.broadcast %24 : vector<1x64xf32> to vector<8x64xf32>
    %26 = arith.addf %23, %25 : vector<8x64xf32>
    %cst_23 = arith.constant 0.000000e+00 : f32
    %27 = vector.broadcast %cst_23 : f32 to vector<8x64xf32>
    %28 = arith.maximumf %26, %27 : vector<8x64xf32>
    %c0_24 = arith.constant 0 : index
    %c0_25 = arith.constant 0 : index
    %29 = vector.load %arg6[%c0_24, %c0_25] : memref<64x128xf32, #tpu.memory_space<vmem>>, vector<64x128xf32>
    %cst_26 = arith.constant dense<0.000000e+00> : vector<8x128xf32>
    %30 = tpu.matmul %28, %29, %cst_26 {dimension_numbers = #tpu.dot_dimension_numbers<[1], [0], [0], [1], [0, 0, 1, 1], [], []>} : vector<8x64xf32>, vector<64x128xf32>, vector<8x128xf32> -> vector<8x128xf32>
    %c0_27 = arith.constant 0 : index
    %c0_28 = arith.constant 0 : index
    %31 = vector.load %arg11[%c0_27, %c0_28] : memref<1x128xf32, #tpu.memory_space<vmem>>, vector<1x128xf32>
    %32 = vector.broadcast %31 : vector<1x128xf32> to vector<8x128xf32>
    %33 = arith.addf %30, %32 : vector<8x128xf32>
    %c0_29 = arith.constant 0 : index
    %c0_30 = arith.constant 0 : index
    %34 = vector.load %arg12[%c0_29, %c0_30] : memref<8x128xf32, #tpu.memory_space<vmem>>, vector<8x128xf32>
    tpu.vector_store %arg12[%c0_29, %c0_30], %33 {strides = array<i32>} : memref<8x128xf32, #tpu.memory_space<vmem>>, vector<8x128xf32>,
    return
  }
  func.func @transform_0(%arg0: i32) -> (i32, i32) {
    %c0_i32 = arith.constant 0 : i32
    %c0_i32_0 = arith.constant 0 : i32
    return %arg0, %c0_i32 : i32, i32
  }
  func.func @transform_1(%arg0: i32) -> (i32, i32) {
    %c0_i32 = arith.constant 0 : i32
    %c0_i32_0 = arith.constant 0 : i32
    %c0_i32_1 = arith.constant 0 : i32
    return %c0_i32, %c0_i32_0 : i32, i32
  }
  func.func @transform_2(%arg0: i32) -> (i32, i32) {
    %c0_i32 = arith.constant 0 : i32
    %c0_i32_0 = arith.constant 0 : i32
    %c0_i32_1 = arith.constant 0 : i32
    return %c0_i32, %c0_i32_0 : i32, i32
  }
  func.func @transform_3(%arg0: i32) -> (i32, i32) {
    %c0_i32 = arith.constant 0 : i32
    %c0_i32_0 = arith.constant 0 : i32
    %c0_i32_1 = arith.constant 0 : i32
    return %c0_i32, %c0_i32_0 : i32, i32
  }
  func.func @transform_4(%arg0: i32) -> (i32, i32) {
    %c0_i32 = arith.constant 0 : i32
    %c0_i32_0 = arith.constant 0 : i32
    %c0_i32_1 = arith.constant 0 : i32
    return %c0_i32, %c0_i32_0 : i32, i32
  }
  func.func @transform_5(%arg0: i32) -> (i32, i32) {
    %c0_i32 = arith.constant 0 : i32
    %c0_i32_0 = arith.constant 0 : i32
    %c0_i32_1 = arith.constant 0 : i32
    return %c0_i32, %c0_i32_0 : i32, i32
  }
  func.func @transform_6(%arg0: i32) -> (i32, i32) {
    %c0_i32 = arith.constant 0 : i32
    %c0_i32_0 = arith.constant 0 : i32
    %c0_i32_1 = arith.constant 0 : i32
    return %c0_i32, %c0_i32_0 : i32, i32
  }
  func.func @transform_7(%arg0: i32) -> (i32, i32) {
    %c0_i32 = arith.constant 0 : i32
    %c0_i32_0 = arith.constant 0 : i32
    %c0_i32_1 = arith.constant 0 : i32
    return %c0_i32, %c0_i32_0 : i32, i32
  }
  func.func @transform_8(%arg0: i32) -> (i32, i32) {
    %c0_i32 = arith.constant 0 : i32
    %c0_i32_0 = arith.constant 0 : i32
    %c0_i32_1 = arith.constant 0 : i32
    return %c0_i32, %c0_i32_0 : i32, i32
  }
  func.func @transform_9(%arg0: i32) -> (i32, i32) {
    %c0_i32 = arith.constant 0 : i32
    %c0_i32_0 = arith.constant 0 : i32
    %c0_i32_1 = arith.constant 0 : i32
    return %c0_i32, %c0_i32_0 : i32, i32
  }
  func.func @transform_10(%arg0: i32) -> (i32, i32) {
    %c0_i32 = arith.constant 0 : i32
    %c0_i32_0 = arith.constant 0 : i32
    %c0_i32_1 = arith.constant 0 : i32
    return %c0_i32, %c0_i32_0 : i32, i32
  }
  func.func @transform_11(%arg0: i32) -> (i32, i32) {
    %c0_i32 = arith.constant 0 : i32
    %c0_i32_0 = arith.constant 0 : i32
    return %arg0, %c0_i32 : i32, i32
  }
}

</mosaic_0001>

<bundles_post_ra>
// kernel: tpu_custom_call.1
= control target key start
LH: loop header
LB: loop body
LE: loop exit
PB: predicated region body
PF: predicated region fallthrough
CT: control target
= control target key end

     0   :  { %16 = vsyncpa [#allocation3], 0  ;;  %s1516_s0 = inlined_call_operand.vmem [shape: f32[8,16], index: 0, kind: input, shape index: {}]   ;;  %s1517_s1 = inlined_call_operand.vmem [shape: f32[16,512], index: 1, kind: input, shape index: {}]   ;;  %s1518_s2 = inlined_call_operand.hbm [shape: f32[512,256], index: 2, kind: input, shape index: {}]   ;;  %s1519_s3 = inlined_call_operand.hbm [shape: f32[256,128], index: 3, kind: input, shape index: {}]   ;;  %s1520_s4 = inlined_call_operand.vmem [shape: f32[128,64], index: 4, kind: input, shape index: {}]   ;;  %s1521_s5 = inlined_call_operand.vmem [shape: f32[64,128], index: 5, kind: input, shape index: {}]   ;;  %s1522_s6 = inlined_call_operand.vmem [shape: f32[1,512], index: 6, kind: input, shape index: {}]   ;;  %s1523_s7 = inlined_call_operand.vmem [shape: f32[1,256], index: 7, kind: input, shape index: {}]   ;;  %s1524_s8 = inlined_call_operand.vmem [shape: f32[1,128], index: 8, kind: input, shape index: {}]   ;;  %s1525_s9 = inlined_call_operand.vmem [shape: f32[1,64], index: 9, kind: input, shape index: {}]   ;;  %s1526_s10 = inlined_call_operand.vmem [shape: f32[1,128], index: 10, kind: input, shape index: {}]   ;;  %s1527_s11 = inlined_call_operand.hbm [shape: f32[8,128], index: 11, kind: output, shape index: {}]  }
   0x1   :  { %17 = vsyncpa [#allocation6], 0 }
   0x2   :  { %18 = vsyncpa [#allocation4], 0  ;;  %s1253_s17 = smov [#allocation2]   ;;  %s1181_s21 = scalar_lea.hbm %s1518_s2, 16384 }
   0x3   :  { %s28_s18 = sshll.u32 %s1253_s17, 4  ;;  %p1182_p0 = scmp.ne.s32.totalorder %s1518_s2, %s1181_s21  ;;  %s29_s18 = int_to_ptr.vmem [resolvable:$true] %s28_s18 }
   0x4   :  { %p1185_p1 = scmp.lt.u32.totalorder %s1181_s21, %s1518_s2 }
   0x6   :  { %p1187_p2 = pnand %p1185_p1, %p1182_p0 }
   0x8   :  { %1190 = shalt.err (!%p1187_p2)
}
   0x9   :  { %s1191_s26 = scalar_lea.vmem %s29_s18, 16384  ;;  %p1196_p4 = scmp.lt.s32.totalorder %s29_s18, %s29_s18 }
   0xa   :  { %p1192_p3 = scmp.ne.s32.totalorder %s29_s18, %s1191_s26  ;;  %p1197_p5 = scmp.lt.s32.totalorder %s1191_s26, %s1191_s26 }
   0xc   :  { %p1198_p6 = por %p1197_p5, %p1196_p4 }
   0xe   :  { %p1199_p7 = pnand %p1198_p6, %p1192_p3 }
  0x10   :  { %1202 = shalt.err (!%p1199_p7)
}
  0x11   :  { %s1254_s27 = smov 256   ;;  %s1255_s28 = smov 16  }
  0x12   :  { %34 = dma.hbm_to_vmem [thread:$0]  %s1518_s2, 16384, %s29_s18, [#allocation3], %s1254_s27, %s1254_s27, %s1255_s28  }
  0x13   :  { %s1256_s12 = smov [#allocation5]   ;;  %s1203_s16 = scalar_lea.hbm %s1519_s3, 4096 }
  0x14   :  { %s40_s13 = sshll.u32 %s1256_s12, 4  ;;  %p1204_p8 = scmp.ne.s32.totalorder %s1519_s3, %s1203_s16  ;;  %s41_s13 = int_to_ptr.vmem [resolvable:$true] %s40_s13 }
  0x15   :  { %p1207_p9 = scmp.lt.u32.totalorder %s1203_s16, %s1519_s3 }
  0x17   :  { %p1209_p10 = pnand %p1207_p9, %p1204_p8 }
  0x19   :  { %1212 = shalt.err (!%p1209_p10)
}
  0x1a   :  { %s1213_s22 = scalar_lea.vmem %s41_s13, 4096  ;;  %p1218_p12 = scmp.lt.s32.totalorder %s41_s13, %s41_s13 }
  0x1b   :  { %p1214_p11 = scmp.ne.s32.totalorder %s41_s13, %s1213_s22  ;;  %p1219_p13 = scmp.lt.s32.totalorder %s1213_s22, %s1213_s22 }
  0x1d   :  { %p1220_p0 = por %p1219_p13, %p1218_p12 }
  0x1f   :  { %p1221_p1 = pnand %p1220_p0, %p1214_p11 }
  0x21   :  { %1224 = shalt.err (!%p1221_p1)
}
  0x22   :  { %s1257_s2 = smov 128   ;;  %s1258_s18 = smov 8  }
  0x23   :  { %46 = dma.hbm_to_vmem [thread:$0]  %s1519_s3, 4096, %s41_s13, [#allocation6], %s1257_s2, %s1257_s2, %s1258_s18  }
  0x24   :  { %1247 = dma.done.wait [#allocation3], 16384  }
  0x25   :  { %1248 = vsyncadd [#allocation3], 4294950912 }
  0x26   :  { %1249 = dma.done.wait [#allocation6], 4096  }
  0x27   :  { %1250 = vsyncadd [#allocation6], 4294963200  ;;  %v1259_v0 = vmov 0.0   ;;  %v69_v1 = vld [vmem:[%s1517_s1 + $0x8] sm:$0xff]  ;;  %v68_v3 = vld [vmem:[%s1517_s1] sm:$0xff]  ;;  %vm98_vm0 = vcmask 130048  }
  0x28   :  { %166 = vmatprep.mubr.f32.mxu1 %v1259_v0  ;;  %v73_v2 = vld [vmem:[%s1517_s1 + $0x28] sm:$0xff]  ;;  %v72_v5 = vld [vmem:[%s1517_s1 + $0x20] sm:$0xff]  ;;  %v71_v6 = vld [vmem:[%s1517_s1 + $0x18] sm:$0xff]  ;;  %vm1261_vm1 = vmmov 0   ;;  %vm751_vm2 = vcmask 523264   ;;  %s1262_s25 = smov [#allocation7]  }
  0x29   :  { %v963_v4 = vpack.c.bf16 %v73_v2, %v69_v1  ;;  %v965_v7 = vpack.c.bf16 %v72_v5, %v68_v3  ;;  %v67_v8 = vld [vmem:[%s1516_s0] sm:$0xff]  ;;  %v75_v9 = vld [vmem:[%s1517_s1 + $0x38] sm:$0xff]  ;;  %v70_v10 = vld [vmem:[%s1517_s1 + $0x10] sm:$0xff]  ;;  %s832_s26 = sshll.u32 %s1262_s25, 4  ;;  %s833_s26 = int_to_ptr.vmem [resolvable:$true] %s832_s26 }
  0x2a   :  { %v74_v11 = vld [vmem:[%s1517_s1 + $0x30] sm:$0xff]  ;;  %v967_v12 = vpack.c.bf16 %v75_v9, %v71_v6  ;;  %v249_v13 = vld [vmem:[#allocation2 + $0x8] sm:$0xff]  ;;  %v251_v14 = vld [vmem:[#allocation2 + $0x18] sm:$0xff]  ;;  %p1230_p3 = scmp.lt.s32.totalorder %s833_s26, %s833_s26 }
  0x2b   :  { %964 = vmatprep.subr.bf16.mxu1 %v963_v4  ;;  %v248_v15 = vld [vmem:[#allocation2] sm:$0xff]  ;;  %v969_v16 = vpack.c.bf16 %v74_v11, %v70_v10  ;;  %v971_v17 = vpack.c.bf16 %v251_v14, %v249_v13  ;;  %v250_v18 = vld [vmem:[#allocation2 + $0x10] sm:$0xff]  ;;  %v253_v19 = vld [vmem:[#allocation2 + $0x28] sm:$0xff] }
  0x2c   :  { %966 = vmatpush1.bf16.msra.mxu1 %v965_v7  ;;  %v255_v20 = vld [vmem:[#allocation2 + $0x38] sm:$0xff]  ;;  %v973_v21 = vpack.c.bf16 %v250_v18, %v248_v15  ;;  %v252_v23 = vld [vmem:[#allocation2 + $0x20] sm:$0xff]  ;;  %v254_v24 = vld [vmem:[#allocation2 + $0x30] sm:$0xff] }
  0x2d   :  { %968 = vmatprep.subr.bf16.mxu1 %v967_v12  ;;  %v975_v22 = vpack.c.bf16 %v255_v20, %v253_v19  ;;  %v257_v25 = vld [vmem:[#allocation2 + $0x48] sm:$0xff]  ;;  %972 = vmatprep.subr.bf16.mxu0 %v971_v17  ;;  %v259_v26 = vld [vmem:[#allocation2 + $0x58] sm:$0xff]  ;;  %v977_v27 = vpack.c.bf16 %v254_v24, %v252_v23  ;;  %v256_v29 = vld [vmem:[#allocation2 + $0x40] sm:$0xff] }
  0x2e   :  { %974 = vmatpush1.bf16.msra.mxu0 %v973_v21  ;;  %v979_v28 = vpack.c.bf16 %v259_v26, %v257_v25  ;;  %v258_v30 = vld [vmem:[#allocation2 + $0x50] sm:$0xff]  ;;  %v261_v31 = vld [vmem:[#allocation2 + $0x68] sm:$0xff]  ;;  %v263_v32 = vld [vmem:[#allocation2 + $0x78] sm:$0xff] }
  0x2f   :  { %842 = vmatmul.mubr.msk.f32.vlgmr.msra.gmra.mrb[0].mxu1 %vm98_vm0, %v67_v8  ;;  %976 = vmatprep.subr.bf16.mxu0 %v975_v22  ;;  %v981_v33 = vpack.c.bf16 %v258_v30, %v256_v29  ;;  %v983_v34 = vpack.c.bf16 %v263_v32, %v261_v31  ;;  %v260_v35 = vld [vmem:[#allocation2 + $0x60] sm:$0xff]  ;;  %v262_v36 = vld [vmem:[#allocation2 + $0x70] sm:$0xff]  ;;  %v265_v37 = vld [vmem:[#allocation2 + $0x88] sm:$0xff] }
  0x30   :  { %970 = vmatpush1.bf16.msra.mxu1 %v969_v16  ;;  %237 = vmatprep.mubr.f32.mxu1 %v1259_v0  ;;  %v267_v38 = vld [vmem:[#allocation2 + $0x98] sm:$0xff]  ;;  %v985_v39 = vpack.c.bf16 %v262_v36, %v260_v35  ;;  %v264_v41 = vld [vmem:[#allocation2 + $0x80] sm:$0xff]  ;;  %v266_v42 = vld [vmem:[#allocation2 + $0x90] sm:$0xff] }
  0x31   :  { %v987_v40 = vpack.c.bf16 %v267_v38, %v265_v37  ;;  %v269_v43 = vld [vmem:[#allocation2 + $0xa8] sm:$0xff]  ;;  %v271_v44 = vld [vmem:[#allocation2 + $0xb8] sm:$0xff]  ;;  %v989_v45 = vpack.c.bf16 %v266_v42, %v264_v41  ;;  %v268_v47 = vld [vmem:[#allocation2 + $0xa0] sm:$0xff] }
  0x32   :  { %978 = vmatpush1.bf16.msra.mxu0 %v977_v27  ;;  %v991_v46 = vpack.c.bf16 %v271_v44, %v269_v43  ;;  %v270_v48 = vld [vmem:[#allocation2 + $0xb0] sm:$0xff]  ;;  %v273_v49 = vld [vmem:[#allocation2 + $0xc8] sm:$0xff]  ;;  %v275_v50 = vld [vmem:[#allocation2 + $0xd8] sm:$0xff] }
  0x33   :  { %843 = vmatmul.mubr.msk.f32.vlgmr.msra.gmra.mrb[2].mxu1 %vm98_vm0, %v67_v8  ;;  %980 = vmatprep.subr.bf16.mxu0 %v979_v28  ;;  %v993_v51 = vpack.c.bf16 %v270_v48, %v268_v47  ;;  %v995_v52 = vpack.c.bf16 %v275_v50, %v273_v49  ;;  %v272_v53 = vld [vmem:[#allocation2 + $0xc0] sm:$0xff]  ;;  %v274_v54 = vld [vmem:[#allocation2 + $0xd0] sm:$0xff]  ;;  %v277_v55 = vld [vmem:[#allocation2 + $0xe8] sm:$0xff] }
  0x34   :  { %v279_v56 = vld [vmem:[#allocation2 + $0xf8] sm:$0xff]  ;;  %v997_v57 = vpack.c.bf16 %v274_v54, %v272_v53  ;;  %v276_v59 = vld [vmem:[#allocation2 + $0xe0] sm:$0xff]  ;;  %v278_v60 = vld [vmem:[#allocation2 + $0xf0] sm:$0xff] }
  0x35   :  { %v999_v58 = vpack.c.bf16 %v279_v56, %v277_v55  ;;  %v281_v61 = vld [vmem:[#allocation2 + $0x108] sm:$0xff]  ;;  %v283_v62 = vld [vmem:[#allocation2 + $0x118] sm:$0xff]  ;;  %v1001_v63 = vpack.c.bf16 %v278_v60, %v276_v59  ;;  %v280_v2 = vld [vmem:[#allocation2 + $0x100] sm:$0xff] }
  0x36   :  { %982 = vmatpush1.bf16.msra.mxu0 %v981_v33  ;;  %v1003_v1 = vpack.c.bf16 %v283_v62, %v281_v61  ;;  %v282_v3 = vld [vmem:[#allocation2 + $0x110] sm:$0xff]  ;;  %v285_v4 = vld [vmem:[#allocation2 + $0x128] sm:$0xff]  ;;  %v287_v5 = vld [vmem:[#allocation2 + $0x138] sm:$0xff] }
  0x37   :  { %984 = vmatprep.subr.bf16.mxu0 %v983_v34  ;;  %v1005_v6 = vpack.c.bf16 %v282_v3, %v280_v2  ;;  %v1007_v7 = vpack.c.bf16 %v287_v5, %v285_v4  ;;  %v284_v8 = vld [vmem:[#allocation2 + $0x120] sm:$0xff]  ;;  %v286_v9 = vld [vmem:[#allocation2 + $0x130] sm:$0xff]  ;;  %v289_v10 = vld [vmem:[#allocation2 + $0x148] sm:$0xff] }
  0x38   :  { %v291_v11 = vld [vmem:[#allocation2 + $0x158] sm:$0xff]  ;;  %v1009_v12 = vpack.c.bf16 %v286_v9, %v284_v8  ;;  %v288_v14 = vld [vmem:[#allocation2 + $0x140] sm:$0xff]  ;;  %v290_v15 = vld [vmem:[#allocation2 + $0x150] sm:$0xff] }
  0x39   :  { %v1011_v13 = vpack.c.bf16 %v291_v11, %v289_v10  ;;  %v293_v16 = vld [vmem:[#allocation2 + $0x168] sm:$0xff]  ;;  %v295_v17 = vld [vmem:[#allocation2 + $0x178] sm:$0xff]  ;;  %v1013_v18 = vpack.c.bf16 %v290_v15, %v288_v14  ;;  %v292_v20 = vld [vmem:[#allocation2 + $0x160] sm:$0xff] }
  0x3a   :  { %986 = vmatpush1.bf16.msra.mxu0 %v985_v39  ;;  %v1015_v19 = vpack.c.bf16 %v295_v17, %v293_v16  ;;  %v294_v21 = vld [vmem:[#allocation2 + $0x170] sm:$0xff]  ;;  %v297_v22 = vld [vmem:[#allocation2 + $0x188] sm:$0xff]  ;;  %v299_v23 = vld [vmem:[#allocation2 + $0x198] sm:$0xff] }
  0x3b   :  { %988 = vmatprep.subr.bf16.mxu0 %v987_v40  ;;  %v1017_v24 = vpack.c.bf16 %v294_v21, %v292_v20  ;;  %v1019_v25 = vpack.c.bf16 %v299_v23, %v297_v22  ;;  %v296_v26 = vld [vmem:[#allocation2 + $0x180] sm:$0xff]  ;;  %v298_v27 = vld [vmem:[#allocation2 + $0x190] sm:$0xff]  ;;  %v301_v28 = vld [vmem:[#allocation2 + $0x1a8] sm:$0xff] }
  0x3c   :  { %v303_v29 = vld [vmem:[#allocation2 + $0x1b8] sm:$0xff]  ;;  %v1021_v30 = vpack.c.bf16 %v298_v27, %v296_v26  ;;  %v300_v32 = vld [vmem:[#allocation2 + $0x1a0] sm:$0xff]  ;;  %v302_v33 = vld [vmem:[#allocation2 + $0x1b0] sm:$0xff]  ;;  %v78_v26 = vlaneseq }
  0x3d   :  { %v1023_v31 = vpack.c.bf16 %v303_v29, %v301_v28  ;;  %v305_v34 = vld [vmem:[#allocation2 + $0x1c8] sm:$0xff]  ;;  %v307_v35 = vld [vmem:[#allocation2 + $0x1d8] sm:$0xff]  ;;  %v1025_v36 = vpack.c.bf16 %v302_v33, %v300_v32  ;;  %v304_v38 = vld [vmem:[#allocation2 + $0x1c0] sm:$0xff] }
  0x3e   :  { %990 = vmatpush1.bf16.msra.mxu0 %v989_v45  ;;  %v1027_v37 = vpack.c.bf16 %v307_v35, %v305_v34  ;;  %v306_v39 = vld [vmem:[#allocation2 + $0x1d0] sm:$0xff]  ;;  %v309_v41 = vld [vmem:[#allocation2 + $0x1e8] sm:$0xff]  ;;  %v311_v42 = vld [vmem:[#allocation2 + $0x1f8] sm:$0xff]  ;;  %v1378_v27 = vshrl.u32 %v78_v26, 7 }
  0x3f   :  { %992 = vmatprep.subr.bf16.mxu0 %v991_v46  ;;  %v1029_v40 = vpack.c.bf16 %v306_v39, %v304_v38  ;;  %v1031_v43 = vpack.c.bf16 %v311_v42, %v309_v41  ;;  %v308_v44 = vld [vmem:[#allocation2 + $0x1e0] sm:$0xff]  ;;  %v310_v45 = vld [vmem:[#allocation2 + $0x1f0] sm:$0xff]  ;;  %v313_v47 = vld [vmem:[#allocation2 + $0x208] sm:$0xff] }
  0x40   :  { %v1033_v46 = vpack.c.bf16 %v310_v45, %v308_v44  ;;  %v315_v48 = vld [vmem:[#allocation2 + $0x218] sm:$0xff]  ;;  %v548_v50 = vld [vmem:[#allocation5 + $0x80] sm:$0xff]  ;;  %v533_v54 = vld [vmem:[#allocation5 + $0x8] sm:$0xff]  ;;  %v80_v28 = vsub.s32 0, %v1378_v27  ;;  %v92_v33 = vsub.s32 3, %v1378_v27 }
  0x41   :  { %v1035_v49 = vpack.c.bf16 %v315_v48, %v313_v47  ;;  %v550_v55 = vld [vmem:[#allocation5 + $0x90] sm:$0xff]  ;;  %v551_v56 = vld [vmem:[#allocation5 + $0x98] sm:$0xff]  ;;  %v552_v61 = vld [vmem:[#allocation5 + $0xa0] sm:$0xff] }
  0x42   :  { %994 = vmatpush1.bf16.msra.mxu0 %v993_v51  ;;  %v549_v51 = vld [vmem:[#allocation5 + $0x88] sm:$0xff]  ;;  %v534_v59 = vld [vmem:[#allocation5 + $0x10] sm:$0xff]  ;;  %v535_v60 = vld [vmem:[#allocation5 + $0x18] sm:$0xff] }
  0x43   :  { %996 = vmatprep.subr.bf16.mxu0 %v995_v52  ;;  %v532_v52 = vld [vmem:[#allocation5] sm:$0xff]  ;;  %v1099_v53 = vpack.c.bf16 %v549_v51, %v548_v50  ;;  %v553_v62 = vld [vmem:[#allocation5 + $0xa8] sm:$0xff]  ;;  %v554_v4 = vld [vmem:[#allocation5 + $0xb0] sm:$0xff] }
  0x44   :  { %v536_v2 = vld [vmem:[#allocation5 + $0x20] sm:$0xff]  ;;  %v537_v3 = vld [vmem:[#allocation5 + $0x28] sm:$0xff]  ;;  %v555_v5 = vld [vmem:[#allocation5 + $0xb8] sm:$0xff] }
  0x45   :  { %1100 = vmatprep.subr.bf16.mxu1 %v1099_v53  ;;  %v538_v8 = vld [vmem:[#allocation5 + $0x30] sm:$0xff]  ;;  %v539_v9 = vld [vmem:[#allocation5 + $0x38] sm:$0xff]  ;;  %v556_v10 = vld [vmem:[#allocation5 + $0xc0] sm:$0xff] }
  0x46   :  { %998 = vmatpush1.bf16.msra.mxu0 %v997_v57  ;;  %v1101_v57 = vpack.c.bf16 %v533_v54, %v532_v52  ;;  %v557_v11 = vld [vmem:[#allocation5 + $0xc8] sm:$0xff]  ;;  %v540_v14 = vld [vmem:[#allocation5 + $0x40] sm:$0xff]  ;;  %v558_v16 = vld [vmem:[#allocation5 + $0xd0] sm:$0xff] }
  0x47   :  { %1000 = vmatprep.subr.bf16.mxu0 %v999_v58  ;;  %v1103_v58 = vpack.c.bf16 %v551_v56, %v550_v55  ;;  %v541_v15 = vld [vmem:[#allocation5 + $0x48] sm:$0xff]  ;;  %v559_v17 = vld [vmem:[#allocation5 + $0xd8] sm:$0xff]  ;;  %v542_v20 = vld [vmem:[#allocation5 + $0x50] sm:$0xff] }
  0x48   :  { %1102 = vmatpush3.bf16.msra.mxu1 %v1101_v57  ;;  %v543_v21 = vld [vmem:[#allocation5 + $0x58] sm:$0xff]  ;;  %v560_v22 = vld [vmem:[#allocation5 + $0xe0] sm:$0xff]  ;;  %v561_v23 = vld [vmem:[#allocation5 + $0xe8] sm:$0xff] }
  0x49   :  { %1104 = vmatprep.subr.bf16.mxu1 %v1103_v58  ;;  %v1384_v29 = vld [vmem:[%s1522_s6] sm:$0xf]  ;;  %v314_v38 = vld [vmem:[#allocation2 + $0x210] sm:$0xff]  ;;  %v319_v41 = vld [vmem:[#allocation2 + $0x238] sm:$0xff] }
  0x4a   :  { %1002 = vmatpush1.bf16.msra.mxu0 %v1001_v63  ;;  %v1105_v63 = vpack.c.bf16 %v535_v60, %v534_v59  ;;  %v93_v42 = vrot.slane %v1384_v29, %v92_v33  ;;  %v316_v48 = vld [vmem:[#allocation2 + $0x220] sm:$0xff]  ;;  %v321_v51 = vld [vmem:[#allocation2 + $0x248] sm:$0xff]  ;;  %v323_v52 = vld [vmem:[#allocation2 + $0x258] sm:$0xff] }
  0x4b   :  { %1004 = vmatprep.subr.bf16.mxu0 %v1003_v1  ;;  %v1107_v1 = vpack.c.bf16 %v553_v62, %v552_v61  ;;  %v1043_v56 = vpack.c.bf16 %v323_v52, %v321_v51  ;;  %v320_v57 = vld [vmem:[#allocation2 + $0x240] sm:$0xff]  ;;  %v322_v58 = vld [vmem:[#allocation2 + $0x250] sm:$0xff]  ;;  %v325_v59 = vld [vmem:[#allocation2 + $0x268] sm:$0xff] }
  0x4c   :  { %1106 = vmatpush3.bf16.msra.mxu1 %v1105_v63  ;;  %v327_v60 = vld [vmem:[#allocation2 + $0x278] sm:$0xff]  ;;  %v1045_v61 = vpack.c.bf16 %v322_v58, %v320_v57  ;;  %v324_v63 = vld [vmem:[#allocation2 + $0x260] sm:$0xff]  ;;  %v345_v26 = vld [vmem:[#allocation2 + $0x308] sm:$0xff] }
  0x4d   :  { %1108 = vmatprep.subr.bf16.mxu1 %v1107_v1  ;;  %v1047_v62 = vpack.c.bf16 %v327_v60, %v325_v59  ;;  %v326_v1 = vld [vmem:[#allocation2 + $0x270] sm:$0xff]  ;;  %v360_v59 = vld [vmem:[#allocation2 + $0x380] sm:$0xff] }
  0x4e   :  { %1006 = vmatpush1.bf16.msra.mxu0 %v1005_v6  ;;  %v1109_v6 = vpack.c.bf16 %v537_v3, %v536_v2  ;;  %v329_v2 = vld [vmem:[#allocation2 + $0x288] sm:$0xff]  ;;  %v331_v3 = vld [vmem:[#allocation2 + $0x298] sm:$0xff]  ;;  %v362_v60 = vld [vmem:[#allocation2 + $0x390] sm:$0xff] }
  0x4f   :  { %1008 = vmatprep.subr.bf16.mxu0 %v1007_v7  ;;  %v1111_v7 = vpack.c.bf16 %v555_v5, %v554_v4  ;;  %v1049_v4 = vpack.c.bf16 %v326_v1, %v324_v63  ;;  %v1051_v5 = vpack.c.bf16 %v331_v3, %v329_v2  ;;  %v1085_v63 = vpack.c.bf16 %v362_v60, %v360_v59  ;;  %v364_v2 = vld [vmem:[#allocation2 + $0x3a0] sm:$0xff]  ;;  %v366_v3 = vld [vmem:[#allocation2 + $0x3b0] sm:$0xff]  ;;  %v655_v59 = vld [vmem:[%s1520_s4 + $0x68] sm:$0xff] }
  0x50   :  { %1110 = vmatpush3.bf16.msra.mxu1 %v1109_v6  ;;  %v328_v6 = vld [vmem:[#allocation2 + $0x280] sm:$0xff] }
  0x51   :  { %1112 = vmatprep.subr.bf16.mxu1 %v1111_v7  ;;  %v330_v7 = vld [vmem:[#allocation2 + $0x290] sm:$0xff] }
  0x52   :  { %1010 = vmatpush1.bf16.msra.mxu0 %v1009_v12  ;;  %v1113_v12 = vpack.c.bf16 %v539_v9, %v538_v8  ;;  %v333_v8 = vld [vmem:[#allocation2 + $0x2a8] sm:$0xff]  ;;  %v335_v9 = vld [vmem:[#allocation2 + $0x2b8] sm:$0xff] }
  0x53   :  { %1012 = vmatprep.subr.bf16.mxu0 %v1011_v13  ;;  %v1115_v13 = vpack.c.bf16 %v557_v11, %v556_v10  ;;  %v1053_v10 = vpack.c.bf16 %v330_v7, %v328_v6  ;;  %v1055_v11 = vpack.c.bf16 %v335_v9, %v333_v8  ;;  %v1089_v6 = vpack.c.bf16 %v366_v3, %v364_v2  ;;  %v368_v9 = vld [vmem:[#allocation2 + $0x3c0] sm:$0xff] }
  0x54   :  { %1114 = vmatpush3.bf16.msra.mxu1 %v1113_v12  ;;  %v332_v12 = vld [vmem:[#allocation2 + $0x2a0] sm:$0xff]  ;;  %v88_v7 = vsub.s32 2, %v1378_v27 }
  0x55   :  { %1116 = vmatprep.subr.bf16.mxu1 %v1115_v13  ;;  %v334_v13 = vld [vmem:[#allocation2 + $0x2b0] sm:$0xff]  ;;  %v844_v2 = vld [vmem:[%s1524_s8] ss:$0 sm:$0xff] }
  0x56   :  { %1014 = vmatpush1.bf16.msra.mxu0 %v1013_v18  ;;  %v1117_v18 = vpack.c.bf16 %v541_v15, %v540_v14  ;;  %v337_v14 = vld [vmem:[#allocation2 + $0x2c8] sm:$0xff]  ;;  %v339_v15 = vld [vmem:[#allocation2 + $0x2d8] sm:$0xff] }
  0x57   :  { %1016 = vmatprep.subr.bf16.mxu0 %v1015_v19  ;;  %v1119_v19 = vpack.c.bf16 %v559_v17, %v558_v16  ;;  %v1057_v16 = vpack.c.bf16 %v334_v13, %v332_v12  ;;  %v1059_v17 = vpack.c.bf16 %v339_v15, %v337_v14  ;;  %v375_v12 = vld [vmem:[#allocation2 + $0x3f8] sm:$0xff]  ;;  %v89_v14 = vrot.slane %v1384_v29, %v88_v7 }
  0x58   :  { %1118 = vmatpush3.bf16.msra.mxu1 %v1117_v18  ;;  %v336_v18 = vld [vmem:[#allocation2 + $0x2c0] sm:$0xff] }
  0x59   :  { %1120 = vmatprep.subr.bf16.mxu1 %v1119_v19  ;;  %v338_v19 = vld [vmem:[#allocation2 + $0x2d0] sm:$0xff] }
  0x5a   :  { %1018 = vmatpush1.bf16.msra.mxu0 %v1017_v24  ;;  %v1121_v24 = vpack.c.bf16 %v543_v21, %v542_v20  ;;  %v341_v20 = vld [vmem:[#allocation2 + $0x2e8] sm:$0xff]  ;;  %v343_v21 = vld [vmem:[#allocation2 + $0x2f8] sm:$0xff] }
  0x5b   :  { %1020 = vmatprep.subr.bf16.mxu0 %v1019_v25  ;;  %v1123_v25 = vpack.c.bf16 %v561_v23, %v560_v22  ;;  %v1061_v22 = vpack.c.bf16 %v338_v19, %v336_v18  ;;  %v1063_v23 = vpack.c.bf16 %v343_v21, %v341_v20  ;;  %v544_v21 = vld [vmem:[#allocation5 + $0x60] sm:$0xff] }
  0x5c   :  { %1122 = vmatpush3.bf16.msra.mxu1 %v1121_v24  ;;  %v340_v24 = vld [vmem:[#allocation2 + $0x2e0] sm:$0xff] }
  0x5d   :  { %1124 = vmatprep.subr.bf16.mxu1 %v1123_v25  ;;  %v342_v25 = vld [vmem:[#allocation2 + $0x2f0] sm:$0xff] }
  0x5e   :  { %1022 = vmatpush1.bf16.msra.mxu0 %v1021_v30  ;;  %v84_v30 = vsub.s32 1, %v1378_v27  ;;  %v644_v27 = vld [vmem:[%s1520_s4 + $0x10] sm:$0xff] }
  0x5f   :  { %1024 = vmatprep.subr.bf16.mxu0 %v1023_v31  ;;  %v81_v31 = vrot.slane %v1384_v29, %v80_v28 }
  0x60   :  { %v85_v32 = vrot.slane %v1384_v29, %v84_v30  ;;  %v546_v29 = vld [vmem:[#allocation5 + $0x70] sm:$0xff] }
  0x62   :  { %1026 = vmatpush1.bf16.msra.mxu0 %v1025_v36 }
  0x63   :  { %1028 = vmatprep.subr.bf16.mxu0 %v1027_v37  ;;  %v312_v37 = vld [vmem:[#allocation2 + $0x200] sm:$0xff] }
  0x64   :  { %v1037_v44 = vpack.c.bf16 %v314_v38, %v312_v37  ;;  %v351_v37 = vld [vmem:[#allocation2 + $0x338] sm:$0xff] }
  0x66   :  { %1030 = vmatpush1.bf16.msra.mxu0 %v1029_v40  ;;  %v317_v40 = vld [vmem:[#allocation2 + $0x228] sm:$0xff] }
  0x67   :  { %1032 = vmatprep.subr.bf16.mxu0 %v1031_v43  ;;  %v1039_v47 = vpack.c.bf16 %v319_v41, %v317_v40  ;;  %v348_v40 = vld [vmem:[#allocation2 + $0x320] sm:$0xff]  ;;  %v350_v41 = vld [vmem:[#allocation2 + $0x330] sm:$0xff] }
  0x6a   :  { %1034 = vmatpush1.bf16.msra.mxu0 %v1033_v46 }
  0x6b   :  { %1036 = vmatprep.subr.bf16.mxu0 %v1035_v49  ;;  %v318_v49 = vld [vmem:[#allocation2 + $0x230] sm:$0xff] }
  0x6c   :  { %v1041_v54 = vpack.c.bf16 %v318_v49, %v316_v48  ;;  %v354_v48 = vld [vmem:[#allocation2 + $0x350] sm:$0xff]  ;;  %v357_v49 = vld [vmem:[#allocation2 + $0x368] sm:$0xff] }
 0x102   :  { %v168_v34 = vpop.f32.mrb[0].mxu1 }
 0x103   :  { %v169_v35 = vadd.f32 %v168_v34, %v81_v31  ;;  %v170_v36 = vpop.f32.mrb[1].mxu1  ;;  %v347_v31 = vld [vmem:[#allocation2 + $0x318] sm:$0xff]  ;;  %v344_v34 = vld [vmem:[#allocation2 + $0x300] sm:$0xff] }
 0x104   :  { %v171_v39 = vadd.f32 %v170_v36, %v85_v32  ;;  %v1065_v32 = vpack.c.bf16 %v342_v25, %v340_v24  ;;  %v1067_v33 = vpack.c.bf16 %v347_v31, %v345_v26  ;;  %v349_v36 = vld [vmem:[#allocation2 + $0x328] sm:$0xff]  ;;  %v562_v24 = vld [vmem:[#allocation5 + $0xf0] sm:$0xff]  ;;  %v563_v25 = vld [vmem:[#allocation5 + $0xf8] sm:$0xff] }
 0x105   :  { %v244_v46 = vmax.f32 %v169_v35, 0.0  ;;  %v346_v35 = vld [vmem:[#allocation2 + $0x310] sm:$0xff]  ;;  %v1127_v26 = vpack.c.bf16 %v563_v25, %v562_v24  ;;  %v547_v31 = vld [vmem:[#allocation5 + $0x78] sm:$0xff] }
 0x106   :  { %v245_v43 = vmax.f32 %v171_v39, 0.0  ;;  %v1395_v45 = vpop.f32.mrb[2].mxu1  ;;  %v1069_v38 = vpack.c.bf16 %v346_v35, %v344_v34  ;;  %v1071_v39 = vpack.c.bf16 %v351_v37, %v349_v36 }
 0x107   :  { %v241_v50 = vpop.f32.mrb[3].mxu1  ;;  %v240_v19 = vadd.f32 %v1395_v45, %v89_v14  ;;  %v376_v45 = vld [vmem:[%s1523_s7] sm:$0x3]  ;;  %v741_v14 = vld [vmem:[%s1521_s5 + $0x28] sm:$0xff] }
 0x108   :  { %452 = vmatprep.mubr.f32.mxu0 %v245_v43  ;;  %v242_v53 = vadd.f32 %v241_v50, %v93_v42  ;;  %v353_v42 = vld [vmem:[#allocation2 + $0x348] sm:$0xff]  ;;  %v355_v43 = vld [vmem:[#allocation2 + $0x358] sm:$0xff]  ;;  %v381_v34 = vrot.slane %v376_v45, %v80_v28  ;;  %v385_v35 = vrot.slane %v376_v45, %v84_v30 }
 0x109   :  { %453 = vmatmul.mubr.f32.vlgmr.msra.gmra.mrb[0].mxu0 %v244_v46  ;;  %v1075_v46 = vpack.c.bf16 %v355_v43, %v353_v42  ;;  %v359_v50 = vld [vmem:[#allocation2 + $0x378] sm:$0xff]  ;;  %v246_v20 = vmax.f32 %v240_v19, 0.0 }
 0x10a   :  { %1038 = vmatpush1.bf16.msra.mxu0 %v1037_v44  ;;  %v247_v55 = vmax.f32 %v242_v53, 0.0  ;;  %v1073_v44 = vpack.c.bf16 %v350_v41, %v348_v40  ;;  %v1079_v52 = vpack.c.bf16 %v359_v50, %v357_v49  ;;  %v356_v53 = vld [vmem:[#allocation2 + $0x360] sm:$0xff]  ;;  %v643_v40 = vld [vmem:[%s1520_s4 + $0x8] sm:$0xff]  ;;  %v645_v28 = vld [vmem:[%s1520_s4 + $0x18] sm:$0xff] }
 0x10b   :  { %1040 = vmatprep.subr.bf16.mxu0 %v1039_v47  ;;  %v352_v47 = vld [vmem:[#allocation2 + $0x340] sm:$0xff]  ;;  %v1135_v30 = vpack.c.bf16 %v645_v28, %v644_v27  ;;  %v648_v49 = vld [vmem:[%s1520_s4 + $0x30] sm:$0xff]  ;;  %v649_v50 = vld [vmem:[%s1520_s4 + $0x38] sm:$0xff] }
 0x10c   :  { %523 = vmatprep.mubr.f32.mxu0 %v247_v55  ;;  %v1077_v51 = vpack.c.bf16 %v354_v48, %v352_v47  ;;  %v361_v55 = vld [vmem:[#allocation2 + $0x388] sm:$0xff] }
 0x10d   :  { %v647_v47 = vld [vmem:[%s1520_s4 + $0x28] sm:$0xff] }
 0x10e   :  { %1042 = vmatpush1.bf16.msra.mxu0 %v1041_v54  ;;  %v358_v54 = vld [vmem:[#allocation2 + $0x370] sm:$0xff] }
 0x10f   :  { %1044 = vmatprep.subr.bf16.mxu0 %v1043_v56  ;;  %v363_v56 = vld [vmem:[#allocation2 + $0x398] sm:$0xff]  ;;  %v1081_v57 = vpack.c.bf16 %v358_v54, %v356_v53  ;;  %v651_v53 = vld [vmem:[%s1520_s4 + $0x48] sm:$0xff] }
 0x110   :  { %v1083_v58 = vpack.c.bf16 %v363_v56, %v361_v55  ;;  %v652_v55 = vld [vmem:[%s1520_s4 + $0x50] sm:$0xff]  ;;  %v653_v56 = vld [vmem:[%s1520_s4 + $0x58] sm:$0xff] }
 0x112   :  { %1046 = vmatpush1.bf16.msra.mxu0 %v1045_v61  ;;  %v365_v61 = vld [vmem:[#allocation2 + $0x3a8] sm:$0xff] }
 0x113   :  { %1048 = vmatprep.subr.bf16.mxu0 %v1047_v62  ;;  %v367_v62 = vld [vmem:[#allocation2 + $0x3b8] sm:$0xff] }
 0x114   :  { %v1087_v1 = vpack.c.bf16 %v367_v62, %v365_v61  ;;  %v656_v61 = vld [vmem:[%s1520_s4 + $0x70] sm:$0xff]  ;;  %v657_v62 = vld [vmem:[%s1520_s4 + $0x78] sm:$0xff] }
 0x116   :  { %1050 = vmatpush1.bf16.msra.mxu0 %v1049_v4  ;;  %v369_v4 = vld [vmem:[#allocation2 + $0x3c8] sm:$0xff] }
 0x117   :  { %1052 = vmatprep.subr.bf16.mxu0 %v1051_v5  ;;  %v371_v5 = vld [vmem:[#allocation2 + $0x3d8] sm:$0xff] }
 0x118   :  { %v1091_v8 = vpack.c.bf16 %v371_v5, %v369_v4  ;;  %v736_v5 = vld [vmem:[%s1521_s5] sm:$0xff] }
 0x11a   :  { %1054 = vmatpush1.bf16.msra.mxu0 %v1053_v10  ;;  %v370_v10 = vld [vmem:[#allocation2 + $0x3d0] sm:$0xff] }
 0x11b   :  { %1056 = vmatprep.subr.bf16.mxu0 %v1055_v11  ;;  %v373_v11 = vld [vmem:[#allocation2 + $0x3e8] sm:$0xff]  ;;  %v1093_v13 = vpack.c.bf16 %v370_v10, %v368_v9  ;;  %v738_v10 = vld [vmem:[%s1521_s5 + $0x10] sm:$0xff] }
 0x11c   :  { %v1095_v15 = vpack.c.bf16 %v375_v12, %v373_v11  ;;  %v739_v11 = vld [vmem:[%s1521_s5 + $0x18] sm:$0xff] }
 0x11d   :  { %v1159_v12 = vpack.c.bf16 %v739_v11, %v738_v10 }
 0x11e   :  { %1058 = vmatpush1.bf16.msra.mxu0 %v1057_v16  ;;  %v372_v16 = vld [vmem:[#allocation2 + $0x3e0] sm:$0xff] }
 0x11f   :  { %1060 = vmatprep.subr.bf16.mxu0 %v1059_v17  ;;  %v374_v17 = vld [vmem:[#allocation2 + $0x3f0] sm:$0xff] }
 0x120   :  { %v1097_v18 = vpack.c.bf16 %v374_v17, %v372_v16  ;;  %v743_v16 = vld [vmem:[%s1521_s5 + $0x38] sm:$0xff] }
 0x122   :  { %1062 = vmatpush1.bf16.msra.mxu0 %v1061_v22  ;;  %v545_v22 = vld [vmem:[#allocation5 + $0x68] sm:$0xff] }
 0x123   :  { %1064 = vmatprep.subr.bf16.mxu0 %v1063_v23  ;;  %v1125_v23 = vpack.c.bf16 %v545_v22, %v544_v21 }
 0x125   :  { %1126 = vmatpush3.bf16.msra.mxu1 %v1125_v23  ;;  %v846_v23 = vld [vmem:[%s1526_s10] ss:$0 sm:$0xff] }
 0x126   :  { %1066 = vmatpush1.bf16.msra.mxu0 %v1065_v32  ;;  %v1129_v32 = vpack.c.bf16 %v547_v31, %v546_v29  ;;  %1128 = vmatprep.subr.bf16.mxu1 %v1127_v26 }
 0x127   :  { %1068 = vmatprep.subr.bf16.mxu0 %v1067_v33  ;;  %v1260_v33 = vmov 0.0|0.0  }
 0x129   :  { %1130 = vmatpush3.bf16.msra.mxu1 %v1129_v32 }
 0x12a   :  { %1070 = vmatpush1.bf16.msra.mxu0 %v1069_v38  ;;  %1131 = vmatprep.subr.bf16.mxu1 %v1260_v33 }
 0x12b   :  { %1072 = vmatprep.subr.bf16.mxu0 %v1071_v39  ;;  %v642_v39 = vld [vmem:[%s1520_s4] sm:$0xff] }
 0x12c   :  { %v1132_v43 = vpack.c.bf16 %v643_v40, %v642_v39 }
 0x12e   :  { %1074 = vmatpush1.bf16.msra.mxu0 %v1073_v44 }
 0x12f   :  { %1076 = vmatprep.subr.bf16.mxu0 %v1075_v46  ;;  %v646_v46 = vld [vmem:[%s1520_s4 + $0x20] sm:$0xff] }
 0x130   :  { %v1138_v48 = vpack.c.bf16 %v647_v47, %v646_v46 }
 0x132   :  { %1078 = vmatpush1.bf16.msra.mxu0 %v1077_v51  ;;  %v1141_v51 = vpack.c.bf16 %v649_v50, %v648_v49 }
 0x133   :  { %1080 = vmatprep.subr.bf16.mxu0 %v1079_v52  ;;  %v650_v52 = vld [vmem:[%s1520_s4 + $0x40] sm:$0xff] }
 0x134   :  { %v1144_v54 = vpack.c.bf16 %v651_v53, %v650_v52 }
 0x136   :  { %1082 = vmatpush1.bf16.msra.mxu0 %v1081_v57  ;;  %v1147_v57 = vpack.c.bf16 %v653_v56, %v652_v55 }
 0x137   :  { %1084 = vmatprep.subr.bf16.mxu0 %v1083_v58  ;;  %v654_v58 = vld [vmem:[%s1520_s4 + $0x60] sm:$0xff] }
 0x138   :  { %v1150_v60 = vpack.c.bf16 %v655_v59, %v654_v58 }
 0x13a   :  { %1086 = vmatpush1.bf16.msra.mxu0 %v1085_v63  ;;  %v1153_v63 = vpack.c.bf16 %v657_v62, %v656_v61 }
 0x13b   :  { %1088 = vmatprep.subr.bf16.mxu0 %v1087_v1 }
 0x13e   :  { %1090 = vmatpush1.bf16.msra.mxu0 %v1089_v6  ;;  %v737_v6 = vld [vmem:[%s1521_s5 + $0x8] sm:$0xff] }
 0x13f   :  { %1092 = vmatprep.subr.bf16.mxu0 %v1091_v8  ;;  %v1156_v8 = vpack.c.bf16 %v737_v6, %v736_v5 }
 0x142   :  { %1094 = vmatpush1.bf16.msra.mxu0 %v1093_v13  ;;  %v740_v13 = vld [vmem:[%s1521_s5 + $0x20] sm:$0xff] }
 0x143   :  { %1096 = vmatprep.subr.bf16.mxu0 %v1095_v15  ;;  %v1162_v15 = vpack.c.bf16 %v741_v14, %v740_v13 }
 0x146   :  { %1098 = vmatpush1.bf16.msra.mxu0 %v1097_v18  ;;  %v845_v18 = vld [vmem:[%s1525_s9] ss:$0 sm:$0xff] }
 0x149   :  { %524 = vmatmul.mubr.f32.vlgmr.msra.gmra.mrb[0].mxu0 %v246_v20 }
 0x21c   :  { %v525_v36 = vpop.f32.mrb[0].mxu0 }
 0x21d   :  { %v1167_v37 = vadd.f32 %v525_v36, %v381_v34  ;;  %v527_v38 = vpop.f32.mrb[1].mxu0 }
 0x21e   :  { %v1168_v41 = vadd.f32 %v527_v38, %v385_v35 }
 0x21f   :  { %v530_v44 = vmax.f32 %v1167_v37, 0.0 }
 0x220   :  { %v531_v42 = vmax.f32 %v1168_v41, 0.0 }
 0x222   :  { %635 = vmatprep.mubr.f32.mxu1 %v531_v42 }
 0x223   :  { %636 = vmatmul.mubr.f32.vlgmr.msra.gmra.mrb[4].mxu1 %v530_v44 }
 0x224   :  { %1133 = vmatpush3.bf16.msra.mxu1 %v1132_v43  ;;  %941 = vmatprep.mubr.msk.f32.mxu1 %vm1261_vm1, %v1259_v0 }
 0x225   :  { %1134 = vmatprep.subr.bf16.mxu1 %v1260_v33 }
 0x228   :  { %1136 = vmatpush3.bf16.msra.mxu1 %v1135_v30 }
 0x229   :  { %1137 = vmatprep.subr.bf16.mxu1 %v1260_v33 }
 0x22c   :  { %1139 = vmatpush3.bf16.msra.mxu1 %v1138_v48 }
 0x22d   :  { %1140 = vmatprep.subr.bf16.mxu1 %v1260_v33 }
 0x230   :  { %1142 = vmatpush3.bf16.msra.mxu1 %v1141_v51 }
 0x231   :  { %1143 = vmatprep.subr.bf16.mxu1 %v1260_v33 }
 0x234   :  { %1145 = vmatpush3.bf16.msra.mxu1 %v1144_v54 }
 0x235   :  { %1146 = vmatprep.subr.bf16.mxu1 %v1260_v33 }
 0x238   :  { %1148 = vmatpush3.bf16.msra.mxu1 %v1147_v57 }
 0x239   :  { %1149 = vmatprep.subr.bf16.mxu1 %v1260_v33 }
 0x23c   :  { %1151 = vmatpush3.bf16.msra.mxu1 %v1150_v60 }
 0x23d   :  { %1152 = vmatprep.subr.bf16.mxu1 %v1260_v33 }
 0x240   :  { %1154 = vmatpush3.bf16.msra.mxu1 %v1153_v63 }
 0x241   :  { %1155 = vmatprep.subr.bf16.mxu1 %v1260_v33 }
 0x2f6   :  { %v880_v1 = vpop.f32.mrb[4].mxu1 }
 0x2f7   :  { %v881_v3 = vpop.f32.mrb[5].mxu1 }
 0x2f8   :  { %v882_v4 = vadd.f32 %v881_v3, %v880_v1 }
 0x2fa   :  { %v638_v7 = vadd.f32 %v882_v4, %v844_v2 }
 0x2fc   :  { %v641_v9 = vmax.f32 %v638_v7, 0.0 }
 0x2fe   :  { %942 = vmatmul.mubr.f32.vlgmr.msra.gmra.mrb[6].mxu1 %v641_v9 }
 0x2ff   :  { %1157 = vmatpush3.bf16.msra.mxu1 %v1156_v8  ;;  %960 = vmatprep.mubr.msk.f32.mxu1 %vm1261_vm1, %v1259_v0  ;;  %v742_v0 = vld [vmem:[%s1521_s5 + $0x30] sm:$0xff]  ;;  %s1225_s5 = scalar_lea.vmem %s833_s26, 128 }
 0x300   :  { %1158 = vmatprep.subr.bf16.mxu1 %v1260_v33  ;;  %v1165_v17 = vpack.c.bf16 %v743_v16, %v742_v0  ;;  %p1226_p2 = scmp.ne.s32.totalorder %s833_s26, %s1225_s5  ;;  %p1231_p4 = scmp.lt.s32.totalorder %s1225_s5, %s1225_s5 }
 0x302   :  { %p1232_p5 = por %p1231_p4, %p1230_p3 }
 0x303   :  { %1160 = vmatpush3.bf16.msra.mxu1 %v1159_v12 }
 0x304   :  { %1161 = vmatprep.subr.bf16.mxu1 %v1260_v33  ;;  %p1233_p6 = pnand %p1232_p5, %p1226_p2 }
 0x307   :  { %1163 = vmatpush3.bf16.msra.mxu1 %v1162_v15 }
 0x308   :  { %1164 = vmatprep.subr.bf16.mxu1 %v1260_v33 }
 0x30b   :  { %1166 = vmatpush3.bf16.msra.mxu1 %v1165_v17 }
 0x3d1   :  { %v731_v19 = vpop.f32.mrb[6].mxu1 }
 0x3d2   :  { %v732_v20 = vadd.f32 %v845_v18, %v731_v19  ;;  %v943_v21 = vpop.f32.mrb[7].mxu1 }
 0x3d4   :  { %v735_v22 = vmax.f32 %v732_v20, 0.0 }
 0x3d6   :  { %961 = vmatmul.mubr.msk.f32.vlgmr.msra.gmra.mrb[8].mxu1 %vm751_vm2, %v735_v22 }
 0x4a9   :  { %v821_v24 = vpop.f32.mrb[8].mxu1 }
 0x4aa   :  { %v822_v25 = vadd.f32 %v846_v23, %v821_v24  ;;  %v962_v26 = vpop.f32.mrb[9].mxu1 }
 0x4ac   :  { %825 = vst [vmem:[#allocation7] sm:$0xff] %v822_v25 }
 0x4ad   :  { %1236 = shalt.err (!%p1233_p6)
}
 0x4ae   :  { %s1237_s27 = scalar_lea.hbm %s1527_s11, 128 }
 0x4af   :  { %p1238_p7 = scmp.ne.s32.totalorder %s1527_s11, %s1237_s27  ;;  %p1241_p8 = scmp.lt.u32.totalorder %s1237_s27, %s1527_s11 }
 0x4b1   :  { %p1243_p9 = pnand %p1241_p8, %p1238_p7 }
 0x4b3   :  { %1246 = shalt.err (!%p1243_p9)
}
 0x4b4   :  { %835 = dma.vmem_to_hbm [thread:$0]  %s833_s26, 128, %s1527_s11, [#allocation4]  }
 0x4b5   :  { %1251 = dma.done.wait [#allocation4], 128  }
 0x4b6   :  { %1252 = vsyncadd [#allocation4], 4294967168 }
 0x4b7   :  { %839 = vsyncpa [#allocation3], 1 }
 0x4b8   :  { %840 = vsyncpa [#allocation6], 1 }
 0x4b9   :  { %841 = vsyncpa [#allocation4], 1 }

</bundles_post_ra>
